<compile_context>
chip_gen: v7x
topology: tpu7x:2x2x1
jax: 0.10.0
libtpu: 0.0.40
codegen_flags: <defaults>
</compile_context>

<pallas_src>
import functools

import jax
import jax.numpy as jnp
from jax.experimental import pallas as pl
from jax.experimental.pallas import tpu as pltpu

OUT_RAW = 13   # real fc3 output width
OUT_PAD = 16   # padded output width (block last dim == full array dim -> legal)

IN_F, H1, H2 = 32, 128, 64


def bidnet_kernel(x_ref, w1_ref, b1_ref, w2_ref, b2_ref, w3_ref, b3_ref, o_ref):
    # In-kernel f32 -> bf16 cast of the activations (VALU has huge slack here).
    x = x_ref[...].astype(jnp.bfloat16)
    # Layer 1: (TB,32)bf16 @ (32,128)bf16 -> f32 acc, +bias, ReLU (epilogue f32)
    h1 = jnp.dot(x, w1_ref[...], preferred_element_type=jnp.float32)
    h1 = jnp.maximum(h1 + b1_ref[...], 0.0)
    # Layer 2: (TB,128) @ (128,64) -> f32 acc, +bias, ReLU
    h2 = jnp.dot(h1.astype(jnp.bfloat16), w2_ref[...],
                 preferred_element_type=jnp.float32)
    h2 = jnp.maximum(h2 + b2_ref[...], 0.0)
    # Layer 3: (TB,64) @ (64,16) -> f32; columns 13..15 are zeros (padded W3/b3)
    h3 = jnp.dot(h2.astype(jnp.bfloat16), w3_ref[...],
                 preferred_element_type=jnp.float32)
    o_ref[...] = h3 + b3_ref[...]


def _round_up(n, m):
    return ((n + m - 1) // m) * m


def _choose_tb(batch, tb_target):
    """Batch tile: multiple of 16, as large as possible, but split medium/large
    batches into >= 2 grid steps so v7x megacore has something to shard and the
    x/out streams pipeline against compute."""
    b16 = _round_up(max(batch, 1), 16)
    if b16 > tb_target:
        return tb_target
    if b16 >= 2048:                       # each half still >= ~1k rows of work
        return _round_up((b16 + 1) // 2, 16)
    return b16                            # tiny batch: single tile


def prepare_params(params):
    """One-time conversion of raw f32 params into kernel-ready operands:
    bf16 weights, f32 biases, fc3 padded 13 -> 16 output features."""
    w1, b1, w2, b2, w3, b3 = params
    w1b = w1.astype(jnp.bfloat16)                                   # (32, 128)
    w2b = w2.astype(jnp.bfloat16)                                   # (128, 64)
    w3p = jnp.zeros((H2, OUT_PAD), jnp.bfloat16).at[:, :OUT_RAW].set(
        w3.astype(jnp.bfloat16))                                    # (64, 16)
    b3p = jnp.zeros((1, OUT_PAD), jnp.float32).at[:, :OUT_RAW].set(b3)
    return (w1b, b1.astype(jnp.float32), w2b, b2.astype(jnp.float32), w3p, b3p)


@functools.partial(jax.jit, static_argnames=("tb_target",))
def bidnet_forward(x, kparams, *, tb_target=4096):
    """x: [B, 32] float32. kparams: output of prepare_params(). Returns [B, 13] f32."""
    w1b, b1, w2b, b2, w3p, b3p = kparams
    B = x.shape[0]

    TB = _choose_tb(B, tb_target)
    grid = (pl.cdiv(B, TB),)

    def tiled(shape):       # streamed per batch tile
        return pl.BlockSpec(shape, lambda i: (i, 0),
                            memory_space=pltpu.MemorySpace.VMEM)

    def resident(shape):    # same block every grid step -> stays in VMEM
        return pl.BlockSpec(shape, lambda i: (0, 0),
                            memory_space=pltpu.MemorySpace.VMEM)

    flops = 2 * B * (IN_F * H1 + H1 * H2 + H2 * OUT_PAD)
    bytes_accessed = (
        B * IN_F * 4 + B * OUT_PAD * 4                 # x stream (f32) + out stream
        + (w1b.size + w2b.size + w3p.size) * 2         # bf16 weights
        + (b1.size + b2.size + b3p.size) * 4           # f32 biases
    )

    out_padded = pl.pallas_call(
        bidnet_kernel,
        out_shape=jax.ShapeDtypeStruct((B, OUT_PAD), jnp.float32),
        grid=grid,
        in_specs=[
            tiled((TB, IN_F)),
            resident(w1b.shape), resident(b1.shape),
            resident(w2b.shape), resident(b2.shape),
            resident(w3p.shape), resident(b3p.shape),
        ],
        out_specs=tiled((TB, OUT_PAD)),
        compiler_params=pltpu.CompilerParams(
            dimension_semantics=("parallel",),
        ),
        cost_estimate=pl.CostEstimate(
            flops=flops, transcendentals=0, bytes_accessed=bytes_accessed),
    )(x, w1b, b1, w2b, b2, w3p, b3p)

    return out_padded[:, :OUT_RAW]


def init_params(key):
    """PyTorch nn.Linear default init (U[-1/sqrt(fan_in), 1/sqrt(fan_in)]).
    Weights stored as [in_features, out_features] (transpose of torch's [out, in])."""
    dims = [(IN_F, H1), (H1, H2), (H2, OUT_RAW)]
    params = []
    for (fan_in, fan_out) in dims:
        key, kw, kb = jax.random.split(key, 3)
        bound = 1.0 / (fan_in ** 0.5)
        w = jax.random.uniform(kw, (fan_in, fan_out), jnp.float32, -bound, bound)
        b = jax.random.uniform(kb, (1, fan_out), jnp.float32, -bound, bound)
        params.extend([w, b])
    return tuple(params)


def reference_forward(x, params):
    w1, b1, w2, b2, w3, b3 = params
    h = jnp.maximum(x @ w1 + b1, 0.0)
    h = jnp.maximum(h @ w2 + b2, 0.0)
    return h @ w3 + b3


if __name__ == "__main__":
    key = jax.random.PRNGKey(0)
    kx, kx2, kp = jax.random.split(key, 3)
    raw_params = init_params(kp)
    kparams = prepare_params(raw_params)   # one-time cast/pad, hoisted out of forward

    # Small batch (harness-scale usage).
    batch = 8
    x = jax.random.normal(kx, (batch, IN_F), jnp.float32)
    out = jax.block_until_ready(bidnet_forward(x, kparams))
    ref = reference_forward(x, raw_params)
    assert out.shape == (batch, OUT_RAW), out.shape
    # bf16 MXU operands with f32 accumulation -> relaxed tolerance vs f32 reference.
    assert jnp.allclose(out, ref, atol=5e-2, rtol=5e-2), "mismatch vs reference (B=8)"

    # Exercise the masked partial-block path (B not a multiple of the 16-row tile).
    batch2 = 200
    x2 = jax.random.normal(kx2, (batch2, IN_F), jnp.float32)
    out2 = jax.block_until_ready(bidnet_forward(x2, kparams))
    ref2 = reference_forward(x2, raw_params)
    assert out2.shape == (batch2, OUT_RAW), out2.shape
    assert jnp.allclose(out2, ref2, atol=5e-2, rtol=5e-2), "mismatch vs reference (B=200)"

    print("KERNEL_OK")
</pallas_src>

<mosaic_0001>
module attributes {stable_mosaic.version = 11 : i64} {
  func.func @bidnet_kernel(%arg0: i32, %arg1: memref<16x32xf32, #tpu.memory_space<vmem>>, %arg2: memref<32x128xbf16, #tpu.memory_space<vmem>>, %arg3: memref<1x128xf32, #tpu.memory_space<vmem>>, %arg4: memref<128x64xbf16, #tpu.memory_space<vmem>>, %arg5: memref<1x64xf32, #tpu.memory_space<vmem>>, %arg6: memref<64x16xbf16, #tpu.memory_space<vmem>>, %arg7: memref<1x16xf32, #tpu.memory_space<vmem>>, %arg8: memref<16x16xf32, #tpu.memory_space<vmem>>) attributes {dimension_semantics = [#tpu.dimension_semantics<parallel>], iteration_bounds = array<i64: 1>, scalar_prefetch = 0 : i64, scratch_operands = 0 : i64, tpu.core_type = #tpu.core_type<tc>, window_params = [{transform_indices = @transform_0, window_bounds = array<i64: 16, 32>}, {pipeline_mode = #tpu.pipeline_mode<synchronous>, transform_indices = @transform_1, window_bounds = array<i64: 32, 128>}, {pipeline_mode = #tpu.pipeline_mode<synchronous>, transform_indices = @transform_2, window_bounds = array<i64: 1, 128>}, {pipeline_mode = #tpu.pipeline_mode<synchronous>, transform_indices = @transform_3, window_bounds = array<i64: 128, 64>}, {pipeline_mode = #tpu.pipeline_mode<synchronous>, transform_indices = @transform_4, window_bounds = array<i64: 1, 64>}, {pipeline_mode = #tpu.pipeline_mode<synchronous>, transform_indices = @transform_5, window_bounds = array<i64: 64, 16>}, {pipeline_mode = #tpu.pipeline_mode<synchronous>, transform_indices = @transform_6, window_bounds = array<i64: 1, 16>}, {transform_indices = @transform_7, window_bounds = array<i64: 16, 16>}]} {
    %c0 = arith.constant 0 : index
    %c0_0 = arith.constant 0 : index
    %0 = vector.load %arg1[%c0, %c0_0] : memref<16x32xf32, #tpu.memory_space<vmem>>, vector<16x32xf32>
    %1 = arith.truncf %0 : vector<16x32xf32> to vector<16x32xbf16>
    %c0_1 = arith.constant 0 : index
    %c0_2 = arith.constant 0 : index
    %2 = vector.load %arg2[%c0_1, %c0_2] : memref<32x128xbf16, #tpu.memory_space<vmem>>, vector<32x128xbf16>
    %cst = arith.constant dense<0.000000e+00> : vector<16x128xf32>
    %3 = tpu.matmul %1, %2, %cst {dimension_numbers = #tpu.dot_dimension_numbers<[1], [0], [0], [1], [0, 0, 1, 1], [], []>} : vector<16x32xbf16>, vector<32x128xbf16>, vector<16x128xf32> -> vector<16x128xf32>
    %c0_3 = arith.constant 0 : index
    %c0_4 = arith.constant 0 : index
    %4 = vector.load %arg3[%c0_3, %c0_4] : memref<1x128xf32, #tpu.memory_space<vmem>>, vector<1x128xf32>
    %5 = vector.broadcast %4 : vector<1x128xf32> to vector<16x128xf32>
    %6 = arith.addf %3, %5 : vector<16x128xf32>
    %cst_5 = arith.constant 0.000000e+00 : f32
    %7 = vector.broadcast %cst_5 : f32 to vector<16x128xf32>
    %8 = arith.maximumf %6, %7 : vector<16x128xf32>
    %9 = arith.truncf %8 : vector<16x128xf32> to vector<16x128xbf16>
    %c0_6 = arith.constant 0 : index
    %c0_7 = arith.constant 0 : index
    %10 = vector.load %arg4[%c0_6, %c0_7] : memref<128x64xbf16, #tpu.memory_space<vmem>>, vector<128x64xbf16>
    %cst_8 = arith.constant dense<0.000000e+00> : vector<16x64xf32>
    %11 = tpu.matmul %9, %10, %cst_8 {dimension_numbers = #tpu.dot_dimension_numbers<[1], [0], [0], [1], [0, 0, 1, 1], [], []>} : vector<16x128xbf16>, vector<128x64xbf16>, vector<16x64xf32> -> vector<16x64xf32>
    %c0_9 = arith.constant 0 : index
    %c0_10 = arith.constant 0 : index
    %12 = vector.load %arg5[%c0_9, %c0_10] : memref<1x64xf32, #tpu.memory_space<vmem>>, vector<1x64xf32>
    %13 = vector.broadcast %12 : vector<1x64xf32> to vector<16x64xf32>
    %14 = arith.addf %11, %13 : vector<16x64xf32>
    %cst_11 = arith.constant 0.000000e+00 : f32
    %15 = vector.broadcast %cst_11 : f32 to vector<16x64xf32>
    %16 = arith.maximumf %14, %15 : vector<16x64xf32>
    %17 = arith.truncf %16 : vector<16x64xf32> to vector<16x64xbf16>
    %c0_12 = arith.constant 0 : index
    %c0_13 = arith.constant 0 : index
    %18 = vector.load %arg6[%c0_12, %c0_13] : memref<64x16xbf16, #tpu.memory_space<vmem>>, vector<64x16xbf16>
    %cst_14 = arith.constant dense<0.000000e+00> : vector<16x16xf32>
    %19 = tpu.matmul %17, %18, %cst_14 {dimension_numbers = #tpu.dot_dimension_numbers<[1], [0], [0], [1], [0, 0, 1, 1], [], []>} : vector<16x64xbf16>, vector<64x16xbf16>, vector<16x16xf32> -> vector<16x16xf32>
    %c0_15 = arith.constant 0 : index
    %c0_16 = arith.constant 0 : index
    %20 = vector.load %arg7[%c0_15, %c0_16] : memref<1x16xf32, #tpu.memory_space<vmem>>, vector<1x16xf32>
    %21 = vector.broadcast %20 : vector<1x16xf32> to vector<16x16xf32>
    %22 = arith.addf %19, %21 : vector<16x16xf32>
    %c0_17 = arith.constant 0 : index
    %c0_18 = arith.constant 0 : index
    %23 = vector.load %arg8[%c0_17, %c0_18] : memref<16x16xf32, #tpu.memory_space<vmem>>, vector<16x16xf32>
    tpu.vector_store %arg8[%c0_17, %c0_18], %22 {strides = array<i32>} : memref<16x16xf32, #tpu.memory_space<vmem>>, vector<16x16xf32>,
    return
  }
  func.func @transform_0(%arg0: i32) -> (i32, i32) {
    %c0_i32 = arith.constant 0 : i32
    %c0_i32_0 = arith.constant 0 : i32
    return %arg0, %c0_i32 : i32, i32
  }
  func.func @transform_1(%arg0: i32) -> (i32, i32) {
    %c0_i32 = arith.constant 0 : i32
    %c0_i32_0 = arith.constant 0 : i32
    %c0_i32_1 = arith.constant 0 : i32
    return %c0_i32, %c0_i32_0 : i32, i32
  }
  func.func @transform_2(%arg0: i32) -> (i32, i32) {
    %c0_i32 = arith.constant 0 : i32
    %c0_i32_0 = arith.constant 0 : i32
    %c0_i32_1 = arith.constant 0 : i32
    return %c0_i32, %c0_i32_0 : i32, i32
  }
  func.func @transform_3(%arg0: i32) -> (i32, i32) {
    %c0_i32 = arith.constant 0 : i32
    %c0_i32_0 = arith.constant 0 : i32
    %c0_i32_1 = arith.constant 0 : i32
    return %c0_i32, %c0_i32_0 : i32, i32
  }
  func.func @transform_4(%arg0: i32) -> (i32, i32) {
    %c0_i32 = arith.constant 0 : i32
    %c0_i32_0 = arith.constant 0 : i32
    %c0_i32_1 = arith.constant 0 : i32
    return %c0_i32, %c0_i32_0 : i32, i32
  }
  func.func @transform_5(%arg0: i32) -> (i32, i32) {
    %c0_i32 = arith.constant 0 : i32
    %c0_i32_0 = arith.constant 0 : i32
    %c0_i32_1 = arith.constant 0 : i32
    return %c0_i32, %c0_i32_0 : i32, i32
  }
  func.func @transform_6(%arg0: i32) -> (i32, i32) {
    %c0_i32 = arith.constant 0 : i32
    %c0_i32_0 = arith.constant 0 : i32
    %c0_i32_1 = arith.constant 0 : i32
    return %c0_i32, %c0_i32_0 : i32, i32
  }
  func.func @transform_7(%arg0: i32) -> (i32, i32) {
    %c0_i32 = arith.constant 0 : i32
    %c0_i32_0 = arith.constant 0 : i32
    return %arg0, %c0_i32 : i32, i32
  }
}

</mosaic_0001>

<bundles_post_ra>
// kernel: bidnet_forward.1
= control target key start
LH: loop header
LB: loop body
LE: loop exit
PB: predicated region body
PF: predicated region fallthrough
CT: control target
= control target key end

     0   :  { %12 = vsyncpa [#allocation3], 0  ;;  %v439_v1 = vmov 0.0   ;;  %vm440_vm0 = vmmov 0   ;;  %vm54_vm1 = vcmask 261120   ;;  %vm256_vm2 = vcmask 523264   ;;  %s553_s0 = inlined_call_operand.vmem [shape: f32[8,32], index: 0, kind: input, shape index: {}]   ;;  %s554_s1 = inlined_call_operand.vmem [shape: bf16[32,128], index: 1, kind: input, shape index: {}]   ;;  %s555_s2 = inlined_call_operand.vmem [shape: f32[1,128], index: 2, kind: input, shape index: {}]   ;;  %s556_s3 = inlined_call_operand.vmem [shape: bf16[128,64], index: 3, kind: input, shape index: {}]   ;;  %s557_s4 = inlined_call_operand.vmem [shape: f32[1,64], index: 4, kind: input, shape index: {}]   ;;  %s558_s5 = inlined_call_operand.vmem [shape: bf16[64,16], index: 5, kind: input, shape index: {}]   ;;  %s559_s6 = inlined_call_operand.vmem [shape: f32[1,16], index: 6, kind: input, shape index: {}]   ;;  %s560_s7 = inlined_call_operand.hbm [shape: f32[8,16], index: 7, kind: output, shape index: {}]  }
   0x1   :  { %v401_v0 = vld [vmem:[%s554_s1] sm:$0xff]   ;;  %356 = vmatprep.subr.bf16.mxu0 %v439_v1  ;;  %364 = vmatprep.subr.bf16.mxu1 %v439_v1  ;;  %v402_v2 = vld [vmem:[%s554_s1 + $0x8] sm:$0xff]   ;;  %v405_v8 = vld [vmem:[%s556_s3 + $0x10] sm:$0xff]   ;;  %vm301_vm3 = vcmask 130048  }
   0x2   :  { %357 = vmatpush3.bf16.msra.mxu0 %v401_v0  ;;  %v28_v3 = vld [vmem:[%s553_s0] sm:$0xff]  ;;  %v29_v4 = vld [vmem:[%s553_s0 + $0x8] sm:$0xff]  ;;  %360 = vmatprep.mubr.msk.bf16.mxu0 %vm440_vm0, %v439_v1  ;;  %v406_v9 = vld [vmem:[%s556_s3 + $0x18] sm:$0xff]  }
   0x3   :  { %358 = vmatprep.subr.bf16.mxu0 %v439_v1  ;;  %v403_v5 = vld [vmem:[%s556_s3] sm:$0xff]   ;;  %380 = vmatprep.mubr.msk.bf16.mxu1 %vm440_vm0, %v439_v1  ;;  %v30_v6 = vpack.c.bf16 %v29_v4, %v28_v3  ;;  %v404_v7 = vld [vmem:[%s556_s3 + $0x8] sm:$0xff]   ;;  %v409_v12 = vld [vmem:[%s556_s3 + $0x30] sm:$0xff]  }
   0x4   :  { %365 = vmatpush3.bf16.msra.mxu1 %v403_v5  ;;  %v407_v10 = vld [vmem:[%s556_s3 + $0x20] sm:$0xff]   ;;  %v408_v11 = vld [vmem:[%s556_s3 + $0x28] sm:$0xff]   ;;  %v410_v13 = vld [vmem:[%s556_s3 + $0x38] sm:$0xff]  }
   0x5   :  { %366 = vmatprep.subr.bf16.mxu1 %v439_v1  ;;  %v411_v14 = vld [vmem:[%s558_s5] sm:$0xff]   ;;  %v412_v15 = vld [vmem:[%s558_s5 + $0x8] sm:$0xff]   ;;  %v413_v26 = vld [vmem:[%s558_s5 + $0x10] sm:$0xff]  }
   0x6   :  { %359 = vmatpush3.bf16.msra.mxu0 %v402_v2  ;;  %v320_v16 = vld [vmem:[%s555_s2] ss:$0 sm:$0xff]  ;;  %v414_v27 = vld [vmem:[%s558_s5 + $0x18] sm:$0xff]  }
   0x7   :  { %384 = vmatprep.subr.bf16.mxu0 %v439_v1  ;;  %v324_v28 = vld [vmem:[%s557_s4] ss:$0 sm:$0xff] }
   0x8   :  { %367 = vmatpush3.bf16.msra.mxu1 %v404_v7  ;;  %v333_v38 = vld [vmem:[%s559_s6] ss:$0 sm:$0xff] }
   0x9   :  { %361 = vmatmul.mubr.msk.bf16.vlgmr.msra.gmra.mrb[0].mxu0 %vm54_vm1, %v30_v6  ;;  %368 = vmatprep.subr.bf16.mxu1 %v439_v1 }
   0xa   :  { %392 = vmatprep.mubr.msk.bf16.mxu0 %vm440_vm0, %v439_v1  ;;  %385 = vmatpush3.bf16.msra.mxu0 %v411_v14 }
   0xb   :  { %386 = vmatprep.subr.bf16.mxu0 %v439_v1 }
   0xc   :  { %369 = vmatpush3.bf16.msra.mxu1 %v405_v8 }
   0xd   :  { %370 = vmatprep.subr.bf16.mxu1 %v439_v1 }
   0xe   :  { %387 = vmatpush3.bf16.msra.mxu0 %v412_v15 }
   0xf   :  { %388 = vmatprep.subr.bf16.mxu0 %v439_v1 }
  0x10   :  { %371 = vmatpush3.bf16.msra.mxu1 %v406_v9 }
  0x11   :  { %372 = vmatprep.subr.bf16.mxu1 %v439_v1 }
  0x12   :  { %389 = vmatpush3.bf16.msra.mxu0 %v413_v26 }
  0x13   :  { %390 = vmatprep.subr.bf16.mxu0 %v439_v1 }
  0x14   :  { %373 = vmatpush3.bf16.msra.mxu1 %v407_v10 }
  0x15   :  { %374 = vmatprep.subr.bf16.mxu1 %v439_v1 }
  0x16   :  { %391 = vmatpush3.bf16.msra.mxu0 %v414_v27 }
  0x18   :  { %375 = vmatpush3.bf16.msra.mxu1 %v408_v11 }
  0x19   :  { %376 = vmatprep.subr.bf16.mxu1 %v439_v1 }
  0x1c   :  { %377 = vmatpush3.bf16.msra.mxu1 %v409_v12 }
  0x1d   :  { %378 = vmatprep.subr.bf16.mxu1 %v439_v1 }
  0x20   :  { %379 = vmatpush3.bf16.msra.mxu1 %v410_v13 }
  0xdc   :  { %v92_v17 = vpop.f32.mrb[0].mxu0 }
  0xdd   :  { %v93_v18 = vadd.f32 %v320_v16, %v92_v17  ;;  %v362_v19 = vpop.f32.mrb[1].mxu0 }
  0xde   :  { %v95_v20 = vpop.f32.mrb[2].mxu0 }
  0xdf   :  { %v96_v21 = vadd.f32 %v320_v16, %v95_v20  ;;  %v363_v22 = vpop.f32.mrb[3].mxu0  ;;  %v99_v23 = vmax.f32 %v93_v18, 0.0 }
  0xe1   :  { %v100_v24 = vmax.f32 %v96_v21, 0.0 }
  0xe3   :  { %v101_v25 = vpack.c.bf16 %v100_v24, %v99_v23 }
  0xe5   :  { %381 = vmatmul.mubr.bf16.vlgmr.msra.gmra.mrb[0].mxu1 %v101_v25 }
 0x1b8   :  { %v207_v29 = vpop.f32.mrb[0].mxu1 }
 0x1b9   :  { %v208_v30 = vadd.f32 %v324_v28, %v207_v29  ;;  %v382_v31 = vpop.f32.mrb[1].mxu1 }
 0x1ba   :  { %v210_v32 = vpop.f32.mrb[2].mxu1 }
 0x1bb   :  { %v211_v33 = vadd.f32 %v324_v28, %v210_v32  ;;  %v383_v34 = vpop.f32.mrb[3].mxu1  ;;  %v214_v35 = vmax.f32 %v208_v30, 0.0 }
 0x1bd   :  { %v215_v36 = vmax.f32 %v211_v33, 0.0 }
 0x1bf   :  { %v216_v37 = vpack.c.bf16 %v215_v36, %v214_v35 }
 0x1c1   :  { %393 = vmatmul.mubr.msk.bf16.vlgmr.msra.gmra.mrb[4].mxu0 %vm256_vm2, %v216_v37 }
 0x294   :  { %v294_v39 = vpop.f32.mrb[4].mxu0 }
 0x295   :  { %v295_v40 = vadd.f32 %v333_v38, %v294_v39  ;;  %v394_v41 = vpop.f32.mrb[5].mxu0 }
 0x296   :  { %v297_v42 = vpop.f32.mrb[6].mxu0 }
 0x297   :  { %302 = vst.msk [vmem:[#allocation2] sm:$0xff] %vm301_vm3, %v295_v40  ;;  %v298_v43 = vadd.f32 %v333_v38, %v297_v42  ;;  %v395_v44 = vpop.f32.mrb[7].mxu0 }
 0x299   :  { %303 = vst.msk [vmem:[#allocation2 + $0x8] sm:$0xff] %vm301_vm3, %v298_v43 }
 0x29a   :  { %308 = vsyncadd [#allocation3], 128  ;;  %s441_s4 = smov [#allocation2]  }
 0x29b   :  { %s309_s5 = sshll.u32 %s441_s4, 4  ;;  %s310_s5 = int_to_ptr.vmem [resolvable:$true] %s309_s5 }
 0x29c   :  { %s415_s1 = scalar_lea.vmem %s310_s5, 128  ;;  %s419_s0 = scalar_lea.vmem %s310_s5, 256 }
 0x29d   :  { %p416_p0 = scmp.ne.s32.totalorder %s310_s5, %s415_s1  ;;  %p420_p1 = scmp.lt.s32.totalorder %s310_s5, %s310_s5 }
 0x29e   :  { %p421_p2 = scmp.lt.s32.totalorder %s419_s0, %s415_s1 }
 0x2a0   :  { %p422_p3 = por %p421_p2, %p420_p1 }
 0x2a2   :  { %p423_p4 = pnand %p422_p3, %p416_p0 }
 0x2a4   :  { %426 = shalt.err (!%p423_p4)
}
 0x2a5   :  { %s427_s13 = scalar_lea.hbm %s560_s7, 128 }
 0x2a6   :  { %p428_p5 = scmp.ne.s32.totalorder %s560_s7, %s427_s13  ;;  %p431_p6 = scmp.lt.u32.totalorder %s427_s13, %s560_s7 }
 0x2a8   :  { %p433_p7 = pnand %p431_p6, %p428_p5 }
 0x2aa   :  { %436 = shalt.err (!%p433_p7)
}
 0x2ab   :  { %s442_s18 = smov 128   ;;  %s443_s19 = smov 8  }
 0x2ac   :  { %315 = dma.vmem_to_hbm [thread:$0]  %s310_s5, 128, %s560_s7, [#allocation3], %s442_s18, %s442_s18, %s443_s19  }
 0x2ad   :  { %437 = dma.done.wait [#allocation3], 256  }
 0x2ae   :  { %438 = vsyncadd [#allocation3], 4294967040 }
 0x2af   :  { %319 = vsyncpa [#allocation3], 1 }

</bundles_post_ra>
